<compile_context>
chip_gen: v6e
topology: v6e:2x2x1
jax: 0.10.0
libtpu: 0.0.40
codegen_flags: <defaults>
</compile_context>

<pallas_src>
import functools

import jax
import jax.numpy as jnp
from jax import lax
from jax.experimental import pallas as pl
from jax.experimental.pallas import tpu as pltpu


def _bits_rep_kernel(n_cols_ref, pos_ref, neg_ref, out_ref):
    """Build one (row_tile, d_pad) block of batched BitsRepNet outputs.

    n_cols_ref : VMEM (row_tile, 1)        int32  leading columns set to 0
    pos_ref    : VMEM (row_tile, max_bits) int32  +1 positions (pad = -1)
    neg_ref    : VMEM (row_tile, max_bits) int32  -1 positions (pad = -1)
    out_ref    : VMEM (row_tile, d_pad)    float32
    """
    row_tile, d_pad = out_ref.shape
    max_bits = pos_ref.shape[1]

    # Single full-tile column iota, reused by every compare below.
    col = lax.broadcasted_iota(jnp.int32, (row_tile, d_pad), 1)

    # Base fill: 0 on the first n_cols lanes of each row, -10 elsewhere.
    h = jnp.where(col < n_cols_ref[...], 0.0, -10.0).astype(jnp.float32)

    pos = pos_ref[...]
    neg = neg_ref[...]
    # +1 pass first, -1 pass second: negatives override ties (PyTorch order).
    for k in range(max_bits):
        h = jnp.where(col == pos[:, k:k + 1], 1.0, h)
    for k in range(max_bits):
        h = jnp.where(col == neg[:, k:k + 1], -1.0, h)

    out_ref[...] = h  # one unmasked, lane-dense full-tile store


def _round_up(x, m):
    return ((x + m - 1) // m) * m


def _choose_row_tile(batch, d_pad):
    """Pick a row tile: big enough to amortize per-step overhead, small enough
    for VMEM on every generation, and leaving grid >= 2 for v7x dual-TC."""
    # Double-buffered f32 output: 2 * rt * d_pad * 4 B <= ~8 MiB.
    budget_rows = max(8, (((8 << 20) // (2 * d_pad * 4)) // 8) * 8)
    rt = min(256, budget_rows)
    b8 = _round_up(batch, 8)
    if b8 >= 16:
        # Keep at least 2 grid steps so the "parallel" batch axis can be
        # sharded across both v7x TensorCores (no-op on v5e/v6e).
        rt = min(rt, max(8, ((b8 // 2) // 8) * 8))
    else:
        rt = 8
    return rt


@functools.partial(jax.jit, static_argnames=("embed_dim", "row_tile", "trim"))
def bits_rep_net_batched(n_cols, pos_bits, neg_bits, *, embed_dim,
                         row_tile=None, trim=True):
    """Batched BitsRepNet forward.

    n_cols   : (B,)           int32
    pos_bits : (B, max_bits)  int32  bit positions with sign +1, padded with -1
    neg_bits : (B, max_bits)  int32  bit positions with sign -1, padded with -1
    returns  : (B, embed_dim) float32            if trim=True
               (B_pad, D_pad) float32 padded slab if trim=False
    """
    B = n_cols.shape[0]
    max_bits = pos_bits.shape[1]
    d_pad = max(128, _round_up(embed_dim, 128))  # lane-dense output width
    rt = _choose_row_tile(B, d_pad) if row_tile is None else row_tile
    b_pad = _round_up(max(B, rt), rt)

    # Padded rows are inert (n_cols = 0, positions = -1 never match a column).
    n_cols_p = jnp.pad(n_cols.astype(jnp.int32), (0, b_pad - B)).reshape(b_pad, 1)
    pos_p = jnp.pad(pos_bits.astype(jnp.int32), ((0, b_pad - B), (0, 0)),
                    constant_values=-1)
    neg_p = jnp.pad(neg_bits.astype(jnp.int32), ((0, b_pad - B), (0, 0)),
                    constant_values=-1)

    h_pad = pl.pallas_call(
        _bits_rep_kernel,
        out_shape=jax.ShapeDtypeStruct((b_pad, d_pad), jnp.float32),
        grid_spec=pltpu.PrefetchScalarGridSpec(
            num_scalar_prefetch=0,
            grid=(b_pad // rt,),
            in_specs=[
                pl.BlockSpec((rt, 1), lambda i: (i, 0)),
                pl.BlockSpec((rt, max_bits), lambda i: (i, 0)),
                pl.BlockSpec((rt, max_bits), lambda i: (i, 0)),
            ],
            out_specs=pl.BlockSpec((rt, d_pad), lambda i: (i, 0)),
        ),
        compiler_params=pltpu.CompilerParams(
            dimension_semantics=("parallel",),  # v7x: shard batch over both TCs
            vmem_limit_bytes=32 << 20,          # headroom on v5e's 16 MiB default
        ),
    )(n_cols_p, pos_p, neg_p)

    if trim:
        # NOTE: this slice is a separate XLA copy; pass trim=False and consume
        # the padded slab directly when the consumer can handle lane padding.
        return h_pad[:B, :embed_dim]
    return h_pad


def encode_on_bits_batch(samples, *, max_bits):
    """Encode a list of (on_bits, n_cols) samples into device-resident tables.

    Build this ONCE per batch (host-side glue hoisted out of the call path).
    Positions are padded with -1 (required sentinel, see module docstring).
    """
    n_cols_l, pos_l, neg_l = [], [], []
    for on_bits, nc in samples:
        assert len(on_bits) <= max_bits
        p = [int(x) for x, s in on_bits if s == 1]
        n = [int(x) for x, s in on_bits if s == -1]
        assert all(v >= 0 for v in p + n), "negative bit positions unsupported"
        pos_l.append(p + [-1] * (max_bits - len(p)))
        neg_l.append(n + [-1] * (max_bits - len(n)))
        n_cols_l.append(int(nc))
    return (jnp.asarray(n_cols_l, jnp.int32),
            jnp.asarray(pos_l, jnp.int32),
            jnp.asarray(neg_l, jnp.int32))


def bits_rep_net(on_bits, n_cols, *, embed_dim, bits_compress, max_bits=8):
    """Single-sample API parity with the PyTorch module: returns (h, h)."""
    assert embed_dim >= bits_compress
    nc, pos, neg = encode_on_bits_batch([(on_bits, n_cols)], max_bits=max_bits)
    h = bits_rep_net_batched(nc, pos, neg, embed_dim=embed_dim)
    return (h, h)


def _reference(samples, embed_dim):
    """Plain-JAX reference with the exact PyTorch semantics."""
    rows = []
    for on_bits, nc in samples:
        h = jnp.full((embed_dim,), -10.0, dtype=jnp.float32)
        h = h.at[:nc].set(0.0)
        pos = [x for x, s in on_bits if s == 1]
        neg = [x for x, s in on_bits if s == -1]
        if pos:
            h = h.at[jnp.asarray(pos)].set(1.0)
        if neg:
            h = h.at[jnp.asarray(neg)].set(-1.0)
        rows.append(h)
    return jnp.stack(rows, axis=0)


if __name__ == "__main__":
    EMBED_DIM = 32
    BITS_COMPRESS = 16
    MAX_BITS = 8
    BATCH = 10  # not a multiple of 8: exercises row padding; grid becomes 2

    key = jax.random.PRNGKey(0)
    samples = []
    for _ in range(BATCH):
        key, k_nb, k_pos, k_sgn, k_nc = jax.random.split(key, 5)
        n_bits = int(jax.random.randint(k_nb, (), 0, MAX_BITS + 1))
        positions = jax.random.permutation(k_pos, BITS_COMPRESS)[:n_bits]
        signs = jnp.where(jax.random.bernoulli(k_sgn, 0.5, (n_bits,)), 1, -1)
        n_cols = int(jax.random.randint(k_nc, (), 1, BITS_COMPRESS + 1))
        on_bits = [(int(p), int(s))
                   for p, s in zip(positions.tolist(), signs.tolist())]
        samples.append((on_bits, n_cols))

    # Encode the whole batch once (device-resident tables).
    n_cols_arr, pos_arr, neg_arr = encode_on_bits_batch(samples, max_bits=MAX_BITS)

    # Batched kernel call (one pallas_call for all samples).
    h_batch = bits_rep_net_batched(n_cols_arr, pos_arr, neg_arr,
                                   embed_dim=EMBED_DIM)
    jax.block_until_ready(h_batch)

    # Padded-slab path (no trailing slice copy).
    h_slab = bits_rep_net_batched(n_cols_arr, pos_arr, neg_arr,
                                  embed_dim=EMBED_DIM, trim=False)
    jax.block_until_ready(h_slab)

    # Single-sample wrapper, same API as the PyTorch module.
    h1, h2 = bits_rep_net(samples[0][0], samples[0][1],
                          embed_dim=EMBED_DIM, bits_compress=BITS_COMPRESS,
                          max_bits=MAX_BITS)
    jax.block_until_ready(h1)
    jax.block_until_ready(h2)

    ref = _reference(samples, EMBED_DIM)
    assert h_batch.shape == (BATCH, EMBED_DIM) and h_batch.dtype == jnp.float32
    assert jnp.array_equal(h_batch, ref)
    assert h_slab.shape[0] % 8 == 0 and h_slab.shape[1] % 128 == 0
    assert jnp.array_equal(h_slab[:BATCH, :EMBED_DIM], ref)
    assert h1.shape == (1, EMBED_DIM) and h1.dtype == jnp.float32
    assert jnp.array_equal(h1, ref[:1]) and jnp.array_equal(h2, ref[:1])

    print("KERNEL_OK")
</pallas_src>

<mosaic_0001>
module attributes {stable_mosaic.version = 11 : i64} {
  func.func @_bits_rep_kernel(%arg0: i32, %arg1: memref<8x1xi32, #tpu.memory_space<vmem>>, %arg2: memref<8x8xi32, #tpu.memory_space<vmem>>, %arg3: memref<8x8xi32, #tpu.memory_space<vmem>>, %arg4: memref<8x128xf32, #tpu.memory_space<vmem>>) attributes {dimension_semantics = [#tpu.dimension_semantics<parallel>], iteration_bounds = array<i64: 2>, scalar_prefetch = 0 : i64, scratch_operands = 0 : i64, tpu.core_type = #tpu.core_type<tc>, window_params = [{transform_indices = @transform_0, window_bounds = array<i64: 8, 1>}, {transform_indices = @transform_1, window_bounds = array<i64: 8, 8>}, {transform_indices = @transform_2, window_bounds = array<i64: 8, 8>}, {transform_indices = @transform_3, window_bounds = array<i64: 8, 128>}]} {
    %0 = tpu.iota {dimensions = array<i32: 1>} : vector<8x128xi32>
    %c0 = arith.constant 0 : index
    %c0_0 = arith.constant 0 : index
    %1 = vector.load %arg1[%c0, %c0_0] : memref<8x1xi32, #tpu.memory_space<vmem>>, vector<8x1xi32>
    %2 = vector.broadcast %1 : vector<8x1xi32> to vector<8x128xi32>
    %3 = arith.cmpi slt, %0, %2 : vector<8x128xi32>
    %cst = arith.constant 0.000000e+00 : f32
    %cst_1 = arith.constant -1.000000e+01 : f32
    %4 = vector.broadcast %cst : f32 to vector<8x128xf32>
    %5 = vector.broadcast %cst_1 : f32 to vector<8x128xf32>
    %6 = arith.select %3, %4, %5 : vector<8x128xi1>, vector<8x128xf32>
    %c0_2 = arith.constant 0 : index
    %c0_3 = arith.constant 0 : index
    %7 = vector.load %arg2[%c0_2, %c0_3] : memref<8x8xi32, #tpu.memory_space<vmem>>, vector<8x8xi32>
    %c0_4 = arith.constant 0 : index
    %c0_5 = arith.constant 0 : index
    %8 = vector.load %arg3[%c0_4, %c0_5] : memref<8x8xi32, #tpu.memory_space<vmem>>, vector<8x8xi32>
    %9 = vector.extract_strided_slice %7 {offsets = [0, 0], sizes = [8, 1], strides = [1, 1]} : vector<8x8xi32> to vector<8x1xi32>
    %10 = vector.broadcast %9 : vector<8x1xi32> to vector<8x128xi32>
    %11 = arith.cmpi eq, %0, %10 : vector<8x128xi32>
    %cst_6 = arith.constant 1.000000e+00 : f32
    %12 = vector.broadcast %cst_6 : f32 to vector<8x128xf32>
    %13 = arith.select %11, %12, %6 : vector<8x128xi1>, vector<8x128xf32>
    %14 = vector.extract_strided_slice %7 {offsets = [0, 1], sizes = [8, 1], strides = [1, 1]} : vector<8x8xi32> to vector<8x1xi32>
    %15 = vector.broadcast %14 : vector<8x1xi32> to vector<8x128xi32>
    %16 = arith.cmpi eq, %0, %15 : vector<8x128xi32>
    %cst_7 = arith.constant 1.000000e+00 : f32
    %17 = vector.broadcast %cst_7 : f32 to vector<8x128xf32>
    %18 = arith.select %16, %17, %13 : vector<8x128xi1>, vector<8x128xf32>
    %19 = vector.extract_strided_slice %7 {offsets = [0, 2], sizes = [8, 1], strides = [1, 1]} : vector<8x8xi32> to vector<8x1xi32>
    %20 = vector.broadcast %19 : vector<8x1xi32> to vector<8x128xi32>
    %21 = arith.cmpi eq, %0, %20 : vector<8x128xi32>
    %cst_8 = arith.constant 1.000000e+00 : f32
    %22 = vector.broadcast %cst_8 : f32 to vector<8x128xf32>
    %23 = arith.select %21, %22, %18 : vector<8x128xi1>, vector<8x128xf32>
    %24 = vector.extract_strided_slice %7 {offsets = [0, 3], sizes = [8, 1], strides = [1, 1]} : vector<8x8xi32> to vector<8x1xi32>
    %25 = vector.broadcast %24 : vector<8x1xi32> to vector<8x128xi32>
    %26 = arith.cmpi eq, %0, %25 : vector<8x128xi32>
    %cst_9 = arith.constant 1.000000e+00 : f32
    %27 = vector.broadcast %cst_9 : f32 to vector<8x128xf32>
    %28 = arith.select %26, %27, %23 : vector<8x128xi1>, vector<8x128xf32>
    %29 = vector.extract_strided_slice %7 {offsets = [0, 4], sizes = [8, 1], strides = [1, 1]} : vector<8x8xi32> to vector<8x1xi32>
    %30 = vector.broadcast %29 : vector<8x1xi32> to vector<8x128xi32>
    %31 = arith.cmpi eq, %0, %30 : vector<8x128xi32>
    %cst_10 = arith.constant 1.000000e+00 : f32
    %32 = vector.broadcast %cst_10 : f32 to vector<8x128xf32>
    %33 = arith.select %31, %32, %28 : vector<8x128xi1>, vector<8x128xf32>
    %34 = vector.extract_strided_slice %7 {offsets = [0, 5], sizes = [8, 1], strides = [1, 1]} : vector<8x8xi32> to vector<8x1xi32>
    %35 = vector.broadcast %34 : vector<8x1xi32> to vector<8x128xi32>
    %36 = arith.cmpi eq, %0, %35 : vector<8x128xi32>
    %cst_11 = arith.constant 1.000000e+00 : f32
    %37 = vector.broadcast %cst_11 : f32 to vector<8x128xf32>
    %38 = arith.select %36, %37, %33 : vector<8x128xi1>, vector<8x128xf32>
    %39 = vector.extract_strided_slice %7 {offsets = [0, 6], sizes = [8, 1], strides = [1, 1]} : vector<8x8xi32> to vector<8x1xi32>
    %40 = vector.broadcast %39 : vector<8x1xi32> to vector<8x128xi32>
    %41 = arith.cmpi eq, %0, %40 : vector<8x128xi32>
    %cst_12 = arith.constant 1.000000e+00 : f32
    %42 = vector.broadcast %cst_12 : f32 to vector<8x128xf32>
    %43 = arith.select %41, %42, %38 : vector<8x128xi1>, vector<8x128xf32>
    %44 = vector.extract_strided_slice %7 {offsets = [0, 7], sizes = [8, 1], strides = [1, 1]} : vector<8x8xi32> to vector<8x1xi32>
    %45 = vector.broadcast %44 : vector<8x1xi32> to vector<8x128xi32>
    %46 = arith.cmpi eq, %0, %45 : vector<8x128xi32>
    %cst_13 = arith.constant 1.000000e+00 : f32
    %47 = vector.broadcast %cst_13 : f32 to vector<8x128xf32>
    %48 = arith.select %46, %47, %43 : vector<8x128xi1>, vector<8x128xf32>
    %49 = vector.extract_strided_slice %8 {offsets = [0, 0], sizes = [8, 1], strides = [1, 1]} : vector<8x8xi32> to vector<8x1xi32>
    %50 = vector.broadcast %49 : vector<8x1xi32> to vector<8x128xi32>
    %51 = arith.cmpi eq, %0, %50 : vector<8x128xi32>
    %cst_14 = arith.constant -1.000000e+00 : f32
    %52 = vector.broadcast %cst_14 : f32 to vector<8x128xf32>
    %53 = arith.select %51, %52, %48 : vector<8x128xi1>, vector<8x128xf32>
    %54 = vector.extract_strided_slice %8 {offsets = [0, 1], sizes = [8, 1], strides = [1, 1]} : vector<8x8xi32> to vector<8x1xi32>
    %55 = vector.broadcast %54 : vector<8x1xi32> to vector<8x128xi32>
    %56 = arith.cmpi eq, %0, %55 : vector<8x128xi32>
    %cst_15 = arith.constant -1.000000e+00 : f32
    %57 = vector.broadcast %cst_15 : f32 to vector<8x128xf32>
    %58 = arith.select %56, %57, %53 : vector<8x128xi1>, vector<8x128xf32>
    %59 = vector.extract_strided_slice %8 {offsets = [0, 2], sizes = [8, 1], strides = [1, 1]} : vector<8x8xi32> to vector<8x1xi32>
    %60 = vector.broadcast %59 : vector<8x1xi32> to vector<8x128xi32>
    %61 = arith.cmpi eq, %0, %60 : vector<8x128xi32>
    %cst_16 = arith.constant -1.000000e+00 : f32
    %62 = vector.broadcast %cst_16 : f32 to vector<8x128xf32>
    %63 = arith.select %61, %62, %58 : vector<8x128xi1>, vector<8x128xf32>
    %64 = vector.extract_strided_slice %8 {offsets = [0, 3], sizes = [8, 1], strides = [1, 1]} : vector<8x8xi32> to vector<8x1xi32>
    %65 = vector.broadcast %64 : vector<8x1xi32> to vector<8x128xi32>
    %66 = arith.cmpi eq, %0, %65 : vector<8x128xi32>
    %cst_17 = arith.constant -1.000000e+00 : f32
    %67 = vector.broadcast %cst_17 : f32 to vector<8x128xf32>
    %68 = arith.select %66, %67, %63 : vector<8x128xi1>, vector<8x128xf32>
    %69 = vector.extract_strided_slice %8 {offsets = [0, 4], sizes = [8, 1], strides = [1, 1]} : vector<8x8xi32> to vector<8x1xi32>
    %70 = vector.broadcast %69 : vector<8x1xi32> to vector<8x128xi32>
    %71 = arith.cmpi eq, %0, %70 : vector<8x128xi32>
    %cst_18 = arith.constant -1.000000e+00 : f32
    %72 = vector.broadcast %cst_18 : f32 to vector<8x128xf32>
    %73 = arith.select %71, %72, %68 : vector<8x128xi1>, vector<8x128xf32>
    %74 = vector.extract_strided_slice %8 {offsets = [0, 5], sizes = [8, 1], strides = [1, 1]} : vector<8x8xi32> to vector<8x1xi32>
    %75 = vector.broadcast %74 : vector<8x1xi32> to vector<8x128xi32>
    %76 = arith.cmpi eq, %0, %75 : vector<8x128xi32>
    %cst_19 = arith.constant -1.000000e+00 : f32
    %77 = vector.broadcast %cst_19 : f32 to vector<8x128xf32>
    %78 = arith.select %76, %77, %73 : vector<8x128xi1>, vector<8x128xf32>
    %79 = vector.extract_strided_slice %8 {offsets = [0, 6], sizes = [8, 1], strides = [1, 1]} : vector<8x8xi32> to vector<8x1xi32>
    %80 = vector.broadcast %79 : vector<8x1xi32> to vector<8x128xi32>
    %81 = arith.cmpi eq, %0, %80 : vector<8x128xi32>
    %cst_20 = arith.constant -1.000000e+00 : f32
    %82 = vector.broadcast %cst_20 : f32 to vector<8x128xf32>
    %83 = arith.select %81, %82, %78 : vector<8x128xi1>, vector<8x128xf32>
    %84 = vector.extract_strided_slice %8 {offsets = [0, 7], sizes = [8, 1], strides = [1, 1]} : vector<8x8xi32> to vector<8x1xi32>
    %85 = vector.broadcast %84 : vector<8x1xi32> to vector<8x128xi32>
    %86 = arith.cmpi eq, %0, %85 : vector<8x128xi32>
    %cst_21 = arith.constant -1.000000e+00 : f32
    %87 = vector.broadcast %cst_21 : f32 to vector<8x128xf32>
    %88 = arith.select %86, %87, %83 : vector<8x128xi1>, vector<8x128xf32>
    %c0_22 = arith.constant 0 : index
    %c0_23 = arith.constant 0 : index
    %89 = vector.load %arg4[%c0_22, %c0_23] : memref<8x128xf32, #tpu.memory_space<vmem>>, vector<8x128xf32>
    tpu.vector_store %arg4[%c0_22, %c0_23], %88 {strides = array<i32>} : memref<8x128xf32, #tpu.memory_space<vmem>>, vector<8x128xf32>,
    return
  }
  func.func @transform_0(%arg0: i32) -> (i32, i32) {
    %c0_i32 = arith.constant 0 : i32
    %c0_i32_0 = arith.constant 0 : i32
    return %arg0, %c0_i32 : i32, i32
  }
  func.func @transform_1(%arg0: i32) -> (i32, i32) {
    %c0_i32 = arith.constant 0 : i32
    %c0_i32_0 = arith.constant 0 : i32
    return %arg0, %c0_i32 : i32, i32
  }
  func.func @transform_2(%arg0: i32) -> (i32, i32) {
    %c0_i32 = arith.constant 0 : i32
    %c0_i32_0 = arith.constant 0 : i32
    return %arg0, %c0_i32 : i32, i32
  }
  func.func @transform_3(%arg0: i32) -> (i32, i32) {
    %c0_i32 = arith.constant 0 : i32
    %c0_i32_0 = arith.constant 0 : i32
    return %arg0, %c0_i32 : i32, i32
  }
}

</mosaic_0001>

<bundles_post_ra>
// kernel: bits_rep_net_batched.1
= control target key start
LH: loop header
LB: loop body
LE: loop exit
PB: predicated region body
PF: predicated region fallthrough
CT: control target
= control target key end

     0   :  { %8 = vsyncpa [#allocation3], 0  ;;  %s655_s0 = inlined_call_operand.vmem [shape: s32[16,1], index: 0, kind: input, shape index: {}]   ;;  %s656_s1 = inlined_call_operand.vmem [shape: s32[16,8], index: 1, kind: input, shape index: {}]   ;;  %s657_s2 = inlined_call_operand.vmem [shape: s32[16,8], index: 2, kind: input, shape index: {}]   ;;  %s658_s3 = inlined_call_operand.hbm [shape: f32[16,128], index: 3, kind: output, shape index: {}]  }
   0x1   :  { %10 = vsyncpa [#allocation3 + $0x1], 0  ;;  %s556_s12 = smov 0   ;;  %s558_s13 = smov 0  }
   0x2   :  { %s560_s14 = smov 0   ;;  %s562_s15 = smov 0  }
   0x3 LB: > { %s577_s16 = sadd.s32 4294967295, %s524_s15   ;;  %s388_s17 = sadd.s32 4294967294, %s524_s15   ;;  %s524_s15 = sphi %s562_s15, %s664_s15   ;;  %s520_s14 = sphi %s560_s14, %s663_s14   ;;  %s516_s13 = sphi %s558_s13, %s662_s13   ;;  %s512_s12 = sphi %s556_s12, %s661_s12  }
   0x4   : > { %s581_s18 = sadd.s32 1, %s524_s15   ;;  %s101_s19 = sadd.s32 1, %s520_s14 }
   0x5   : > { %s98_s20 = ssub.s32 %s524_s15, %s581_s18  ;;  %p111_p0 = scmp.ne.s32.totalorder %s520_s14, %s516_s13 }
   0x6   : > { %p99_p1 = scmp.eq.s32.totalorder %s98_s20, 0  ;;  %p112_p2 = scmp.eq.s32.totalorder %s577_s16, 1 }
   0x7   : > { %p117_p3 = scmp.ne.s32.totalorder %s516_s13, %s512_s12  ;;  %p118_p4 = scmp.eq.s32.totalorder %s388_s17, 1 }
   0x8   : > { %s592_s21 = scalar_select %p99_p1, %s520_s14, %s101_s19  }
   0x9   : > { %p594_p5 = por %p112_p2, %p111_p0  ;;  %p598_p6 = por %p118_p4, %p117_p3 }
   0xa   : > { %p391_p7 = scmp.ge.s32.totalorder %s524_s15, 1  ;;  %p157_p8 = scmp.lt.s32.totalorder %s524_s15, 3 }
   0xc   : > { %p158_p9 = pnand %p391_p7, %p157_p8 }
   0xd   : > { %p188_p10 = scmp.lt.s32.totalorder (!%p158_p9), %s577_s16, 1  ;;  %s185_s8 = sand.u32 (!%p158_p9), 1, %s516_s13  }
   0xe   : > { %161 = sbr.rel (%p158_p9) target bundleno = 209 (0xd1), region = 32  ;;  %s392_s9 = sshll.u32 (!%p158_p9), %s185_s8, 3 }
   0xf   : > { %s397_s10 = sshll.u32 (!%p158_p9), %s577_s16, 7  ;;  %s187_s11 = scalar_lea.vmem (!%p158_p9), [#allocation2], %s392_s9 }
  0x10   : > { %s305_s17 = sshll.u32 (!%p158_p9), %s187_s11, 4  ;;  %s306_s17 = int_to_ptr.vmem [resolvable:$true] %s305_s17 }
  0x11   : > { %s464_s26 = scalar_lea.vmem (!%p158_p9), %s306_s17, 128 }
  0x12   : > { %p465_p11 = scmp.ne.s32.totalorder (!%p158_p9), %s306_s17, %s464_s26 }
  0x13   : > { %v526_v0 = vmov 1   ;;  %v527_v1 = vmov 0   ;;  %s189_s24 = scalar_select %p188_p10, %s577_s16, 1  ;;  %v528_v4 = vmov 2   ;;  %v529_v5 = vmov 3  }
  0x14   : > { %449 = vset.pattern.permute.xlu1 %v526_v0  ;;  %448 = vset.pattern.permute.xlu0 %v527_v1  ;;  %v530_v6 = vmov 4   ;;  %v531_v7 = vmov 6   ;;  %v532_v8 = vmov 5   ;;  %v533_v10 = vmov 7   ;;  %p466_p12 = pnand %p465_p11, %p594_p5  ;;  %s535_s16 = smov [#allocation2]  }
  0x15   : > { %s393_s25 = sshll.u32 %s189_s24, 3  ;;  %v200_v13 = vlaneseq  ;;  %v534_v19 = vmov -10.0   ;;  %s620_s24 = scalar_lea.hbm %s658_s3, %s397_s10 }
  0x16   : > { %s195_s28 = scalar_lea.vmem %s656_s1, %s393_s25  ;;  %s191_s4 = scalar_lea.vmem %s655_s0, %s393_s25 }
  0x17   : > { %v208_v2 = vld [vmem:[%s195_s28] sm:$0xff]  ;;  %s199_s7 = scalar_lea.vmem %s657_s2, %s393_s25  ;;  %v201_v16 = vand.u32 127, %v200_v13  ;;  %s292_s25 = scalar_lea.sflag [#allocation3], %s185_s8 }
  0x18   : > { %v202_v3 = vld [vmem:[%s191_s4] sm:$0xff]  ;;  %216 = vperm.xlu1 %449, %v208_v2   ;;  %p467_p13 = pneg %p466_p12  ;;  %s468_s27 = sshll.u32 %s535_s16, 4  ;;  %s469_s27 = int_to_ptr.vmem [resolvable:$false] %s468_s27 }
  0x19   : > { %204 = vperm.xlu0 %448, %v202_v3   ;;  %v209_v9 = vld [vmem:[%s199_s7] sm:$0xff]  ;;  %s470_s28 = scalar_lea.vmem %s469_s27, 256  ;;  %p471_p0 = scmp.lt.s32.totalorder %s306_s17, %s469_s27 }
  0x1a   : > { %p472_p1 = scmp.lt.s32.totalorder %s470_s28, %s464_s26 }
  0x1c   : > { %450 = vset.pattern.permute.xlu1 %v528_v4  ;;  %p473_p2 = por %p472_p1, %p471_p0 }
  0x1d   : > { %211 = vperm.xlu0 %448, %v208_v2   ;;  %221 = vperm.xlu1 %450, %v208_v2  }
  0x1e   : > { %p474_p3 = pnand %p473_p2, %p467_p13 }
  0x21   : > { %451 = vset.pattern.permute.xlu0 %v529_v5  ;;  %452 = vset.pattern.permute.xlu1 %v530_v6 }
  0x22   : > { %226 = vperm.xlu0 %451, %v208_v2   ;;  %231 = vperm.xlu1 %452, %v208_v2  }
  0x26   : > { %454 = vset.pattern.permute.xlu0 %v531_v7  ;;  %453 = vset.pattern.permute.xlu1 %v532_v8 }
  0x27   : > { %241 = vperm.xlu0 %454, %v208_v2   ;;  %236 = vperm.xlu1 %453, %v208_v2  }
  0x2b   : > { %457 = vset.pattern.permute.xlu0 %v526_v0  ;;  %455 = vset.pattern.permute.xlu1 %v533_v10 }
  0x2c   : > { %256 = vperm.xlu0 %457, %v209_v9   ;;  %246 = vperm.xlu1 %455, %v208_v2  }
  0x30   : > { %460 = vset.pattern.permute.xlu0 %v530_v6  ;;  %456 = vset.pattern.permute.xlu1 %v527_v1 }
  0x31   : > { %271 = vperm.xlu0 %460, %v209_v9   ;;  %251 = vperm.xlu1 %456, %v209_v9  }
  0x35   : > { %463 = vset.pattern.permute.xlu0 %v533_v10  ;;  %458 = vset.pattern.permute.xlu1 %v528_v4 }
  0x36   : > { %286 = vperm.xlu0 %463, %v209_v9   ;;  %261 = vperm.xlu1 %458, %v209_v9  }
  0x3a   : > { %459 = vset.pattern.permute.xlu1 %v529_v5 }
  0x3b   : > { %266 = vperm.xlu1 %459, %v209_v9  }
  0x3f   : > { %461 = vset.pattern.permute.xlu1 %v532_v8 }
  0x40   : > { %276 = vperm.xlu1 %461, %v209_v9  }
  0x44   : > { %462 = vset.pattern.permute.xlu1 %v531_v7 }
  0x45   : > { %281 = vperm.xlu1 %462, %v209_v9  }
  0x93   : > { %v217_v11 = vpop.permute.xlu1 %216 }
  0x94   : > { %v205_v14 = vpop.permute.xlu0 %204  ;;  %vm218_vm2 = vcmp.eq.s32.totalorder %v201_v16, %v217_v11 }
  0x95   : > { %vm206_vm0 = vcmp.lt.s32.totalorder %v201_v16, %v205_v14 }
  0x96   : > { %v207_v20 = vsel %vm206_vm0, 0.0, %v534_v19 }
  0x98   : > { %v222_v12 = vpop.permute.xlu1 %221  ;;  %v212_v17 = vpop.permute.xlu0 %211 }
  0x99   : > { %vm213_vm1 = vcmp.eq.s32.totalorder %v201_v16, %v212_v17  ;;  %vm223_vm3 = vcmp.eq.s32.totalorder %v201_v16, %v222_v12 }
  0x9a   : > { %v214_v22 = vsel %vm213_vm1, 1.0, %v207_v20 }
  0x9b   : > { %v219_v24 = vsel %vm218_vm2, 1.0, %v214_v22 }
  0x9c   : > { %v224_v26 = vsel %vm223_vm3, 1.0, %v219_v24 }
  0x9d   : > { %v232_v15 = vpop.permute.xlu1 %231  ;;  %v227_v23 = vpop.permute.xlu0 %226 }
  0x9e   : > { %vm228_vm4 = vcmp.eq.s32.totalorder %v201_v16, %v227_v23  ;;  %vm233_vm5 = vcmp.eq.s32.totalorder %v201_v16, %v232_v15 }
  0x9f   : > { %v229_v27 = vsel %vm228_vm4, 1.0, %v224_v26 }
  0xa0   : > { %v234_v30 = vsel %vm233_vm5, 1.0, %v229_v27 }
  0xa2   : > { %v237_v18 = vpop.permute.xlu1 %236  ;;  %v242_v28 = vpop.permute.xlu0 %241 }
  0xa3   : > { %vm238_vm6 = vcmp.eq.s32.totalorder %v201_v16, %v237_v18  ;;  %vm243_vm7 = vcmp.eq.s32.totalorder %v201_v16, %v242_v28 }
  0xa4   : > { %v239_v31 = vsel %vm238_vm6, 1.0, %v234_v30 }
  0xa5   : > { %v244_v33 = vsel %vm243_vm7, 1.0, %v239_v31 }
  0xa7   : > { %v247_v21 = vpop.permute.xlu1 %246  ;;  %v257_v32 = vpop.permute.xlu0 %256 }
  0xa8   : > { %vm248_vm8 = vcmp.eq.s32.totalorder %v201_v16, %v247_v21  ;;  %vm258_vm10 = vcmp.eq.s32.totalorder %v201_v16, %v257_v32 }
  0xa9   : > { %v249_v35 = vsel %vm248_vm8, 1.0, %v244_v33 }
  0xac   : > { %v252_v25 = vpop.permute.xlu1 %251  ;;  %v272_v37 = vpop.permute.xlu0 %271 }
  0xad   : > { %vm253_vm9 = vcmp.eq.s32.totalorder %v201_v16, %v252_v25  ;;  %vm273_vm13 = vcmp.eq.s32.totalorder %v201_v16, %v272_v37 }
  0xae   : > { %v254_v36 = vsel %vm253_vm9, -1.0, %v249_v35 }
  0xaf   : > { %v259_v38 = vsel %vm258_vm10, -1.0, %v254_v36 }
  0xb1   : > { %v262_v29 = vpop.permute.xlu1 %261  ;;  %v287_v42 = vpop.permute.xlu0 %286 }
  0xb2   : > { %vm263_vm11 = vcmp.eq.s32.totalorder %v201_v16, %v262_v29  ;;  %vm288_vm15 = vcmp.eq.s32.totalorder %v201_v16, %v287_v42 }
  0xb3   : > { %v264_v40 = vsel %vm263_vm11, -1.0, %v259_v38 }
  0xb6   : > { %v267_v34 = vpop.permute.xlu1 %266 }
  0xb7   : > { %vm268_vm12 = vcmp.eq.s32.totalorder %v201_v16, %v267_v34 }
  0xb8   : > { %v269_v41 = vsel %vm268_vm12, -1.0, %v264_v40 }
  0xb9   : > { %v274_v43 = vsel %vm273_vm13, -1.0, %v269_v41 }
  0xbb   : > { %v277_v39 = vpop.permute.xlu1 %276 }
  0xbc   : > { %vm278_vm14 = vcmp.eq.s32.totalorder %v201_v16, %v277_v39 }
  0xbd   : > { %v279_v45 = vsel %vm278_vm14, -1.0, %v274_v43 }
  0xc0   : > { %v282_v44 = vpop.permute.xlu1 %281 }
  0xc1   : > { %vm283_vm0 = vcmp.eq.s32.totalorder %v201_v16, %v282_v44 }
  0xc2   : > { %v284_v46 = vsel %vm283_vm0, -1.0, %v279_v45 }
  0xc3   : > { %v289_v47 = vsel %vm288_vm15, -1.0, %v284_v46 }
  0xc4   : > { %290 = vst [vmem:[%s187_s11] sm:$0xff] %v289_v47 }
  0xc5   : > { %477 = shalt.err (!%p474_p3)
}
  0xc6   : > { %s478_s29 = scalar_lea.hbm %s620_s24, 128  ;;  %s482_s5 = scalar_lea.hbm %s658_s3, 256 }
  0xc7   : > { %p479_p4 = scmp.ne.s32.totalorder %s620_s24, %s478_s29  ;;  %p483_p9 = scmp.lt.s32.totalorder %s620_s24, %s658_s3 }
  0xc8   : > { %p484_p10 = scmp.lt.s32.totalorder %s482_s5, %s478_s29 }
  0xc9   : > { %p480_p7 = pnand %p479_p4, %p594_p5 }
  0xca   : > { %p485_p11 = por %p484_p10, %p483_p9 }
  0xcb   : > { %p481_p8 = pneg %p480_p7 }
  0xcd   : > { %p486_p12 = pnand %p485_p11, %p481_p8 }
  0xcf   : > { %489 = shalt.err (!%p486_p12)
}
  0xd0   : > { %400 = dma.vmem_to_hbm [thread:$0]  (%p594_p5), %s306_s17, 128, %s620_s24, %s292_s25  }
  0xd1 PF: > { %p406_p13 = scmp.ge.s32.totalorder %s524_s15, 2  ;;  %s317_s8 = sand.u32 1, %s512_s12  }
  0xd2   : > { %s318_s9 = scalar_lea.sflag [#allocation3], %s317_s8 }
  0xd3   : > { %p403_p0 = pnand %p406_p13, %p598_p6 }
  0xd5   : > { %p404_p1 = pneg %p403_p0 }
  0xd7   : > { %507 = dma.done.wait (%p404_p1), %s318_s9, 128  }
  0xd8   : > { %509 = vsyncadd (%p404_p1), %s318_s9, 4294967168  ;;  %p13_p2 = scmp.ge.s32.totalorder %s581_s18, 4   ;;  %s661_s12 = smov %s516_s13 }
  0xd9   : > { %s662_s13 = smov %s520_s14  ;;  %s663_s14 = smov %s592_s21 }
  0xda   : > { %s664_s15 = smov %s581_s18  ;;  %15 = sbr.rel (!%p13_p2) target bundleno = 3 (0x3), region = 73 }
  0xdf   :  { %323 = vsyncpa [#allocation3], 1 }
  0xe0   :  { %325 = vsyncpa [#allocation3 + $0x1], 1 }

</bundles_post_ra>
